<compile_context>
chip_gen: v6e
topology: v6e:2x2x1
jax: 0.10.0
libtpu: 0.0.40
codegen_flags: <defaults>
</compile_context>

<pallas_src>
import functools

import jax
import jax.numpy as jnp
from jax import lax
from jax.experimental import pallas as pl
from jax.experimental.pallas import tpu as pltpu

LANES = 128
MAX_ROW_TILE = 8192                 # (8192,128) f32 block = 4 MiB
VMEM_LIMIT_BYTES = 32 * 1024 * 1024


def _round_up(x, m):
    return ((x + m - 1) // m) * m


def _sublane_multiple(dtype):
    # f32 -> 8 sublanes, bf16/f16 -> 16, int8/uint8/fp8 -> 32
    return max(8, 32 // jnp.dtype(dtype).itemsize)


def _bce_tile_loss(x_ref, t_ref):
    x = x_ref[...].astype(jnp.float32)
    t = t_ref[...].astype(jnp.float32)
    # numerically stable BCE-with-logits
    return jnp.maximum(x, 0.0) - x * t + jnp.log1p(jnp.exp(-jnp.abs(x)))


def _bce_kernel(x_ref, t_ref, out_ref, acc_ref, *, rows, row_tile, n_real):
    s = pl.program_id(0)            # parallel slice (megacore axis)
    i = pl.program_id(1)            # sequential reduction step within the slice
    n_inner = pl.num_programs(1)
    blk = s * n_inner + i           # global block index, 0 .. n_real-1

    if n_real == 1:
        # Single block covering the whole (rows, 128) slab: block == full array
        # dims, so no masking and no accumulator are needed.
        out_ref[0, 0] = jnp.sum(_bce_tile_loss(x_ref, t_ref))
        return

    @pl.when(i == 0)
    def _():
        acc_ref[...] = jnp.zeros_like(acc_ref)

    groups = row_tile // 8
    last_partial = (rows % row_tile) != 0
    full_cutoff = (n_real - 1) if last_partial else n_real

    @pl.when(blk < full_cutoff)     # full blocks: unmasked hot path
    def _():
        loss = _bce_tile_loss(x_ref, t_ref)
        acc_ref[...] += loss.reshape(groups, 8, LANES).sum(axis=0)

    if last_partial:                # only the last block pays for the mask
        @pl.when(blk == n_real - 1)
        def _():
            loss = _bce_tile_loss(x_ref, t_ref)
            row_ids = lax.broadcasted_iota(jnp.int32, loss.shape, 0)
            valid = (blk * row_tile + row_ids) < rows
            loss = jnp.where(valid, loss, jnp.float32(0.0))
            acc_ref[...] += loss.reshape(groups, 8, LANES).sum(axis=0)

    @pl.when(i == n_inner - 1)
    def _():
        out_ref[0, 0] = jnp.sum(acc_ref[...])


def bce_with_logits_loss_2d(scores, targets, *, max_row_tile=MAX_ROW_TILE):
    """Mean BCE-with-logits over all elements (weight=None, size_average=True).

    `targets` may be any dtype (f32, bf16, int8, ...).  For {0,1} masks, passing
    bf16 or int8 shrinks that HBM stream; all math is done in f32 in-kernel.
    """
    assert scores.shape == targets.shape
    n = scores.size

    x_flat = scores.reshape(-1)
    t_flat = targets.reshape(-1)

    rows = n // LANES
    n_main = rows * LANES
    tail = n - n_main

    total = jnp.float32(0.0)

    if rows > 0:
        if tail:
            # Prefix slice only when n % 128 != 0 (typical U-Net shapes are
            # 128-aligned, in which case the reshape below is a free bitcast).
            x2d = x_flat[:n_main].reshape(rows, LANES)
            t2d = t_flat[:n_main].reshape(rows, LANES)
        else:
            x2d = x_flat.reshape(rows, LANES)
            t2d = t_flat.reshape(rows, LANES)

        sub = max(_sublane_multiple(x2d.dtype), _sublane_multiple(t2d.dtype))

        if rows <= max_row_tile:
            row_tile = rows          # single full-array block: always legal
            n_real = 1
        else:
            nb = pl.cdiv(rows, max_row_tile)
            nb += nb % 2             # even block count -> clean 2-way TC split
            row_tile = _round_up(pl.cdiv(rows, nb), sub)
            n_real = pl.cdiv(rows, row_tile)

        # Feed both v7x TensorCores only when it costs nothing on 1-TC chips
        # (even block count => no duplicated HBM block is ever streamed).
        n_outer = 2 if (n_real >= 2 and n_real % 2 == 0) else 1
        n_inner = n_real // n_outer

        def in_index_map(s, i):
            return (s * n_inner + i, 0)

        tile_spec = pl.BlockSpec((row_tile, LANES), in_index_map)
        out_spec = pl.BlockSpec((1, 1), lambda s, i: (s, 0),
                                memory_space=pltpu.SMEM)

        cost = pl.CostEstimate(
            flops=6 * n_main,
            transcendentals=2 * n_main,
            bytes_accessed=(x2d.size * x2d.dtype.itemsize
                            + t2d.size * t2d.dtype.itemsize
                            + 4 * n_outer),
        )

        partial = pl.pallas_call(
            functools.partial(_bce_kernel, rows=rows, row_tile=row_tile,
                              n_real=n_real),
            out_shape=jax.ShapeDtypeStruct((n_outer, 1), jnp.float32),
            grid_spec=pltpu.PrefetchScalarGridSpec(
                num_scalar_prefetch=0,
                grid=(n_outer, n_inner),
                in_specs=[tile_spec, tile_spec],
                out_specs=out_spec,
                scratch_shapes=[pltpu.VMEM((8, LANES), jnp.float32)],
            ),
            compiler_params=pltpu.CompilerParams(
                dimension_semantics=("parallel", "arbitrary"),
                vmem_limit_bytes=VMEM_LIMIT_BYTES,
            ),
            cost_estimate=cost,
        )(x2d, t2d)

        total = total + jnp.sum(partial)

    if tail:
        # <=127 leftover elements: plain jnp, negligible cost, no padded copy.
        xt = x_flat[n_main:].astype(jnp.float32)
        tt = t_flat[n_main:].astype(jnp.float32)
        total = total + jnp.sum(
            jnp.maximum(xt, 0.0) - xt * tt + jnp.log1p(jnp.exp(-jnp.abs(xt))))

    return total / jnp.float32(n)


def _reference(scores, targets):
    x = scores.reshape(-1).astype(jnp.float32)
    t = targets.reshape(-1).astype(jnp.float32)
    loss = jnp.maximum(x, 0.0) - x * t + jnp.log1p(jnp.exp(-jnp.abs(x)))
    return jnp.mean(loss)


if __name__ == "__main__":
    key = jax.random.PRNGKey(0)
    k1, k2, k3, k4 = jax.random.split(key, 4)

    # 1) U-Net-head style NCHW logits + binary masks (single-block, 128-aligned).
    scores = jax.random.normal(k1, (2, 4, 16, 16), dtype=jnp.float32)
    targets = (jax.random.uniform(k2, (2, 4, 16, 16)) > 0.5).astype(jnp.float32)
    ref = _reference(scores, targets)

    loss = jax.block_until_ready(bce_with_logits_loss_2d(scores, targets))
    assert jnp.allclose(loss, ref, rtol=1e-5, atol=1e-6), (loss, ref)

    # 2) Same data with bf16 targets (exact for {0,1}): narrow target stream.
    loss_bf16 = jax.block_until_ready(
        bce_with_logits_loss_2d(scores, targets.astype(jnp.bfloat16)))
    assert jnp.allclose(loss_bf16, ref, rtol=1e-5, atol=1e-6), (loss_bf16, ref)

    # 3) Multi-block path (forced small tile): accumulator + parallel outer axis
    #    + masked last block + non-multiple-of-128 tail handled in jnp.
    scores3 = jax.random.normal(k3, (2, 4, 60, 65), dtype=jnp.float32)
    targets3 = (jax.random.uniform(k4, (2, 4, 60, 65)) > 0.5).astype(jnp.float32)
    loss3 = jax.block_until_ready(
        bce_with_logits_loss_2d(scores3, targets3, max_row_tile=64))
    ref3 = _reference(scores3, targets3)
    assert jnp.allclose(loss3, ref3, rtol=1e-5, atol=1e-6), (loss3, ref3)

    print("KERNEL_OK")
</pallas_src>

<mosaic_0001>
module attributes {stable_mosaic.version = 11 : i64} {
  func.func @_bce_kernel(%arg0: i32, %arg1: i32, %arg2: memref<16x128xf32, #tpu.memory_space<vmem>>, %arg3: memref<16x128xf32, #tpu.memory_space<vmem>>, %arg4: memref<1x1xf32, #tpu.memory_space<smem>>, %arg5: memref<8x128xf32, #tpu.memory_space<vmem>>) attributes {dimension_semantics = [#tpu.dimension_semantics<parallel>, #tpu.dimension_semantics<arbitrary>], iteration_bounds = array<i64: 1, 1>, scalar_prefetch = 0 : i64, scratch_operands = 1 : i64, tpu.core_type = #tpu.core_type<tc>, window_params = [{transform_indices = @transform_0, window_bounds = array<i64: 16, 128>}, {transform_indices = @transform_1, window_bounds = array<i64: 16, 128>}, {transform_indices = @transform_2, window_bounds = array<i64: 1, 1>}]} {
    %c0 = arith.constant 0 : index
    %c0_0 = arith.constant 0 : index
    %0 = vector.load %arg2[%c0, %c0_0] : memref<16x128xf32, #tpu.memory_space<vmem>>, vector<16x128xf32>
    %c0_1 = arith.constant 0 : index
    %c0_2 = arith.constant 0 : index
    %1 = vector.load %arg3[%c0_1, %c0_2] : memref<16x128xf32, #tpu.memory_space<vmem>>, vector<16x128xf32>
    %cst = arith.constant 0.000000e+00 : f32
    %2 = vector.broadcast %cst : f32 to vector<16x128xf32>
    %3 = arith.maximumf %0, %2 : vector<16x128xf32>
    %4 = arith.mulf %0, %1 : vector<16x128xf32>
    %5 = arith.subf %3, %4 : vector<16x128xf32>
    %6 = math.absf %0 : vector<16x128xf32>
    %cst_3 = arith.constant 0.000000e+00 : f32
    %7 = vector.broadcast %cst_3 : f32 to vector<16x128xf32>
    %8 = arith.subf %7, %6 : vector<16x128xf32>
    %9 = math.exp %8 : vector<16x128xf32>
    %10 = math.log1p %9 : vector<16x128xf32>
    %11 = arith.addf %5, %10 : vector<16x128xf32>
    %12 = vector.shape_cast %11 : vector<16x128xf32> to vector<1x16x128xf32>
    %cst_4 = arith.constant dense<0.000000e+00> : vector<1xf32>
    %13 = vector.multi_reduction <add>, %12, %cst_4 [1, 2] : vector<1x16x128xf32> to vector<1xf32>
    %14 = vector.shape_cast %13 : vector<1xf32> to vector<1x1x1xf32>
    %15 = vector.extract %14[0, 0, 0] : f32 from vector<1x1x1xf32>
    %c0_5 = arith.constant 0 : index
    %c0_6 = arith.constant 0 : index
    %16 = memref.load %arg4[%c0_5, %c0_6] : memref<1x1xf32, #tpu.memory_space<smem>>
    memref.store %15, %arg4[%c0_5, %c0_6] : memref<1x1xf32, #tpu.memory_space<smem>>
    return
  }
  func.func @transform_0(%arg0: i32, %arg1: i32) -> (i32, i32) {
    %c1_i32 = arith.constant 1 : i32
    %0 = arith.muli %arg0, %c1_i32 : i32
    %1 = arith.addi %0, %arg1 : i32
    %c0_i32 = arith.constant 0 : i32
    %c0_i32_0 = arith.constant 0 : i32
    return %1, %c0_i32 : i32, i32
  }
  func.func @transform_1(%arg0: i32, %arg1: i32) -> (i32, i32) {
    %c1_i32 = arith.constant 1 : i32
    %0 = arith.muli %arg0, %c1_i32 : i32
    %1 = arith.addi %0, %arg1 : i32
    %c0_i32 = arith.constant 0 : i32
    %c0_i32_0 = arith.constant 0 : i32
    return %1, %c0_i32 : i32, i32
  }
  func.func @transform_2(%arg0: i32, %arg1: i32) -> (i32, i32) {
    %c0_i32 = arith.constant 0 : i32
    %c0_i32_0 = arith.constant 0 : i32
    return %arg0, %c0_i32 : i32, i32
  }
}

</mosaic_0001>

<bundles_post_ra>
// kernel: tpu_custom_call.1
= control target key start
LH: loop header
LB: loop body
LE: loop exit
PB: predicated region body
PF: predicated region fallthrough
CT: control target
= control target key end

     0   :  { %7 = vsyncpa [#allocation4], 0  ;;  %s215_s0 = inlined_call_operand.hbm [shape: f32[16,128], index: 0, kind: input, shape index: {}]   ;;  %s216_s1 = inlined_call_operand.hbm [shape: f32[16,128], index: 1, kind: input, shape index: {}]   ;;  %s217_s2 = inlined_call_operand.hbm [shape: f32[1,1], index: 2, kind: output, shape index: {}]  }
   0x1   :  { %8 = vsyncpa [#allocation7], 0 }
   0x2   :  { %9 = vsyncpa [#allocation5], 0  ;;  %s186_s9 = smov [#allocation3]  }
   0x3   :  { %s19_s10 = sshll.u32 %s186_s9, 4  ;;  %s20_s10 = int_to_ptr.vmem [resolvable:$true] %s19_s10 }
   0x4   :  { %s140_s11 = scalar_lea.vmem %s20_s10, 256  ;;  %p145_p1 = scmp.lt.s32.totalorder %s20_s10, %s20_s10 }
   0x5   :  { %p141_p0 = scmp.ne.s32.totalorder %s20_s10, %s140_s11  ;;  %p146_p2 = scmp.lt.s32.totalorder %s140_s11, %s140_s11 }
   0x7   :  { %p147_p3 = por %p146_p2, %p145_p1 }
   0x9   :  { %p148_p4 = pnand %p147_p3, %p141_p0 }
   0xb   :  { %151 = shalt.err (!%p148_p4)
}
   0xc   :  { %s187_s12 = smov 128   ;;  %s188_s13 = smov 8  }
   0xd   :  { %25 = dma.hbm_to_vmem [thread:$0]  %s215_s0, 256, %s20_s10, [#allocation4], %s187_s12, %s187_s12, %s188_s13  }
   0xe   :  { %s189_s16 = smov [#allocation6]  }
   0xf   :  { %s35_s17 = sshll.u32 %s189_s16, 4  ;;  %s36_s17 = int_to_ptr.vmem [resolvable:$true] %s35_s17 }
  0x10   :  { %s160_s18 = scalar_lea.vmem %s36_s17, 256  ;;  %p165_p6 = scmp.lt.s32.totalorder %s36_s17, %s36_s17 }
  0x11   :  { %p161_p5 = scmp.ne.s32.totalorder %s36_s17, %s160_s18  ;;  %p166_p7 = scmp.lt.s32.totalorder %s160_s18, %s160_s18 }
  0x13   :  { %p167_p8 = por %p166_p7, %p165_p6 }
  0x15   :  { %p168_p9 = pnand %p167_p8, %p161_p5 }
  0x17   :  { %171 = shalt.err (!%p168_p9)
}
  0x18   :  { %41 = dma.hbm_to_vmem [thread:$0]  %s216_s1, 256, %s36_s17, [#allocation7], %s187_s12, %s187_s12, %s188_s13  }
  0x19   :  { %180 = dma.done.wait [#allocation4], 256  }
  0x1a   :  { %181 = vsyncadd [#allocation4], 4294967040 }
  0x1b   :  { %182 = dma.done.wait [#allocation7], 256  }
  0x1c   :  { %183 = vsyncadd [#allocation7], 4294967040  ;;  %v52_v0 = vld [vmem:[#allocation3] sm:$0xff]  ;;  %v53_v1 = vld [vmem:[#allocation3 + $0x8] sm:$0xff]  ;;  %s190_s1 = smov [#allocation8]  }
  0x1d   :  { %v62_v2 = vand.u32 2147483647, %v52_v0  ;;  %v63_v3 = vand.u32 2147483647, %v53_v1  ;;  %v54_v14 = vld [vmem:[#allocation6] sm:$0xff]  ;;  %v55_v15 = vld [vmem:[#allocation6 + $0x8] sm:$0xff] }
  0x1e   :  { %v56_v17 = vmax.f32 %v52_v0, 0.0  ;;  %v58_v18 = vmul.f32 %v54_v14, %v52_v0  ;;  %v57_v21 = vmax.f32 %v53_v1, 0.0  ;;  %v59_v22 = vmul.f32 %v55_v15, %v53_v1 }
  0x1f   :  { %v64_v4 = vsub.f32 0.0, %v62_v2  ;;  %v65_v5 = vsub.f32 0.0, %v63_v3 }
  0x20   :  { %v60_v26 = vsub.f32 %v56_v17, %v58_v18  ;;  %v61_v29 = vsub.f32 %v57_v21, %v59_v22 }
  0x21   :  { %v66_v6 = vmul.f32 1.442695, %v64_v4  ;;  %v68_v7 = vmul.f32 1.442695, %v65_v5 }
  0x23   :  { %124 = vpow2.f32 %v66_v6 }
  0x24   :  { %126 = vpow2.f32 %v68_v7 }
  0x30   :  { %v125_v8 = vpop.eup %124 }
  0x31   :  { %v127_v9 = vpop.eup %126  ;;  %v70_v10 = vadd.f32 1.0, %v125_v8  ;;  %v73_v12 = vmul.f32 -0.5, %v125_v8  ;;  %v76_v19 = vand.u32 2147483647, %v125_v8 }
  0x32   :  { %v79_v11 = vadd.f32 1.0, %v127_v9  ;;  %v82_v13 = vmul.f32 -0.5, %v127_v9  ;;  %v85_v23 = vand.u32 2147483647, %v127_v9 }
  0x33   :  { %128 = vlog2.f32 %v70_v10  ;;  %v74_v16 = vadd.f32 1.0, %v73_v12  ;;  %vm77_vm0 = vcmp.lt.f32.partialorder %v76_v19, 0.0004427343 }
  0x34   :  { %130 = vlog2.f32 %v79_v11  ;;  %v83_v20 = vadd.f32 1.0, %v82_v13  ;;  %vm86_vm1 = vcmp.lt.f32.partialorder %v85_v23, 0.0004427343 }
  0x35   :  { %v75_v24 = vmul.f32 %v125_v8, %v74_v16 }
  0x36   :  { %v84_v27 = vmul.f32 %v127_v9, %v83_v20 }
  0x40   :  { %v129_v25 = vpop.eup %128 }
  0x41   :  { %v131_v28 = vpop.eup %130  ;;  %v72_v30 = vmul.f32 0.6931472, %v129_v25 }
  0x42   :  { %v81_v31 = vmul.f32 0.6931472, %v131_v28 }
  0x43   :  { %v78_v32 = vsel %vm77_vm0, %v75_v24, %v72_v30 }
  0x44   :  { %v87_v33 = vsel %vm86_vm1, %v84_v27, %v81_v31  ;;  %v88_v34 = vadd.f32 %v78_v32, %v60_v26 }
  0x45   :  { %v89_v35 = vadd.f32 %v87_v33, %v61_v29 }
  0x47   :  { %v90_v36 = vadd.f32 %v89_v35, %v88_v34 }
  0x49   :  { %91 = vadd.xlane.f32.xlu0 %v90_v36 }
  0xd2   :  { %v92_v37 = vpop.xlane.xlu0 %91 }
  0xd3   :  { %v93_v38 = vrot.slane %v92_v37, 4 }
  0xd5   :  { %v94_v39 = vadd.f32 %v93_v38, %v92_v37 }
  0xd7   :  { %v95_v40 = vrot.slane %v94_v39, 2 }
  0xd9   :  { %v96_v41 = vadd.f32 %v95_v40, %v94_v39 }
  0xdb   :  { %v97_v42 = vrot.slane %v96_v41, 1 }
  0xdd   :  { %v98_v43 = vadd.f32 %v97_v42, %v96_v41 }
  0xdf   :  { %117 = vpush %v98_v43 }
 0x110   :  { %s118_s0 = spop %117 }
 0x111   :  { %101 = sst [smem:[#allocation8]] %s118_s0 }
 0x112   :  { %109 = dma.smem_to_hbm %s190_s1, 16, %s217_s2, [#allocation5]  }
 0x113   :  { %184 = dma.done.wait [#allocation5], 16  }
 0x114   :  { %185 = vsyncadd [#allocation5], 4294967280 }
 0x115   :  { %113 = sfence }
 0x116   :  { %114 = vsyncpa [#allocation4], 1 }
 0x117   :  { %115 = vsyncpa [#allocation7], 1 }
 0x118   :  { %116 = vsyncpa [#allocation5], 1 }

</bundles_post_ra>
